<compile_context>
chip_gen: v7x
topology: tpu7x:2x2x1
jax: 0.10.0
libtpu: 0.0.40
codegen_flags: <defaults>
</compile_context>

<pallas_src>
import functools

import jax
import jax.numpy as jnp
import numpy as np
from jax.experimental import pallas as pl
from jax.experimental.pallas import tpu as pltpu


def _make_kernel(num_encoders):
    def kernel(x_ref, w_ref, b_ref, o_ref):
        # x_ref : (1, C, tL)   w_ref : (E, C, C)   b_ref : (E, C, 1)
        h = x_ref[0].astype(jnp.float32)            # (C, tL), lives in vregs
        W = w_ref[...].astype(jnp.float32)          # hoisted cast (E, C, C)
        bias = b_ref[...].astype(jnp.float32)       # hoisted cast (E, C, 1)
        # Statically unrolled encoder chain: one dot per encoder (T folded in).
        for e in range(num_encoders):
            h = jnp.maximum(
                jnp.dot(W[e], h, preferred_element_type=jnp.float32) + bias[e],
                0.0)
        o_ref[0] = h.astype(o_ref.dtype)
    return kernel


def _pick_l_tile(L):
    # Largest lane-dense tile (multiple of 128) that divides L; fall back to
    # the full length (a block equal to the array dim is always legal).
    for t in (2048, 1024, 512, 256, 128):
        if L % t == 0:
            return t
    return L


@functools.partial(jax.jit, static_argnames=())
def signal_encoder(x, trans_matrix, w_stack, b_stack):
    """x: (B, C, L); trans_matrix: (C, C); w_stack: (E, C, C); b_stack: (E, C, 1).

    Returns h permuted to (L, B, C), matching the PyTorch forward.
    """
    B, C, L = x.shape
    E = w_stack.shape[0]

    # Fold trans_matrix into the per-encoder weights (E tiny matmuls, done by
    # XLA outside the kernel):  W'_e @ h == W_e @ (T @ h).
    w_folded = jnp.einsum("eij,jk->eik", w_stack.astype(jnp.float32),
                          trans_matrix.astype(jnp.float32))

    tL = _pick_l_tile(L)
    n_l_tiles = L // tL

    out_bcl = pl.pallas_call(
        _make_kernel(E),
        out_shape=jax.ShapeDtypeStruct((B, C, L), x.dtype),
        grid_spec=pltpu.PrefetchScalarGridSpec(
            num_scalar_prefetch=0,
            grid=(B, n_l_tiles),
            in_specs=[
                pl.BlockSpec((1, C, tL), lambda b, l: (b, 0, l)),  # x tile
                pl.BlockSpec((E, C, C),  lambda b, l: (0, 0, 0)),  # folded W
                pl.BlockSpec((E, C, 1),  lambda b, l: (0, 0, 0)),  # bias stack
            ],
            out_specs=pl.BlockSpec((1, C, tL), lambda b, l: (b, 0, l)),
        ),
        compiler_params=pltpu.CompilerParams(
            dimension_semantics=("parallel", "parallel")),
    )(x, w_folded, b_stack)

    # h.permute(2, 0, 1): (B, C, L) -> (L, B, C). Required by the module's
    # output contract; pure layout glue done by XLA.
    return jnp.transpose(out_bcl, (2, 0, 1))


def _reference(x, trans_matrix, w_stack, b_stack):
    h = x.astype(jnp.float32)
    for e in range(w_stack.shape[0]):
        th = jnp.einsum("ij,bjl->bil", trans_matrix, h)
        wh = jnp.einsum("ij,bjl->bil", w_stack[e], th) + b_stack[e][None]
        h = jnp.maximum(wh, 0.0)
    return jnp.transpose(h, (2, 0, 1))


if __name__ == "__main__":
    B, C, L, E = 2, 8, 128, 3

    key = jax.random.PRNGKey(0)
    kx, kt, kw, kb = jax.random.split(key, 4)

    x = jax.random.normal(kx, (B, C, L), dtype=jnp.float32)
    trans_matrix = jax.random.normal(kt, (C, C), dtype=jnp.float32) / np.sqrt(C)
    w_stack = jax.random.normal(kw, (E, C, C), dtype=jnp.float32) / np.sqrt(C)
    b_stack = 0.1 * jax.random.normal(kb, (E, C, 1), dtype=jnp.float32)

    out = signal_encoder(x, trans_matrix, w_stack, b_stack)
    out = jax.block_until_ready(out)

    ref = _reference(x, trans_matrix, w_stack, b_stack)
    assert out.shape == (L, B, C), out.shape
    # Folding T into W reassociates the matmul; allow a slightly looser tol.
    np.testing.assert_allclose(np.asarray(out), np.asarray(ref),
                               rtol=1e-4, atol=1e-4)
    print("KERNEL_OK")
</pallas_src>

<mosaic_0001>
module attributes {stable_mosaic.version = 11 : i64} {
  func.func @kernel(%arg0: i32, %arg1: i32, %arg2: memref<1x8x128xf32, #tpu.memory_space<vmem>>, %arg3: memref<3x8x8xf32, #tpu.memory_space<vmem>>, %arg4: memref<3x8x1xf32, #tpu.memory_space<vmem>>, %arg5: memref<1x8x128xf32, #tpu.memory_space<vmem>>) attributes {dimension_semantics = [#tpu.dimension_semantics<parallel>, #tpu.dimension_semantics<parallel>], iteration_bounds = array<i64: 2, 1>, scalar_prefetch = 0 : i64, scratch_operands = 0 : i64, tpu.core_type = #tpu.core_type<tc>, window_params = [{transform_indices = @transform_0, window_bounds = array<i64: 1, 8, 128>}, {pipeline_mode = #tpu.pipeline_mode<synchronous>, transform_indices = @transform_1, window_bounds = array<i64: 3, 8, 8>}, {pipeline_mode = #tpu.pipeline_mode<synchronous>, transform_indices = @transform_2, window_bounds = array<i64: 3, 8, 1>}, {transform_indices = @transform_3, window_bounds = array<i64: 1, 8, 128>}]} {
    %c0 = arith.constant 0 : index
    %c0_0 = arith.constant 0 : index
    %c0_1 = arith.constant 0 : index
    %0 = vector.load %arg2[%c0, %c0_0, %c0_1] : memref<1x8x128xf32, #tpu.memory_space<vmem>>, vector<1x8x128xf32>
    %1 = vector.shape_cast %0 : vector<1x8x128xf32> to vector<8x128xf32>
    %c0_2 = arith.constant 0 : index
    %c0_3 = arith.constant 0 : index
    %c0_4 = arith.constant 0 : index
    %2 = vector.load %arg3[%c0_2, %c0_3, %c0_4] : memref<3x8x8xf32, #tpu.memory_space<vmem>>, vector<3x8x8xf32>
    %c0_5 = arith.constant 0 : index
    %c0_6 = arith.constant 0 : index
    %c0_7 = arith.constant 0 : index
    %3 = vector.load %arg4[%c0_5, %c0_6, %c0_7] : memref<3x8x1xf32, #tpu.memory_space<vmem>>, vector<3x8x1xf32>
    %4 = vector.extract_strided_slice %2 {offsets = [0, 0, 0], sizes = [1, 8, 8], strides = [1, 1, 1]} : vector<3x8x8xf32> to vector<1x8x8xf32>
    %5 = vector.shape_cast %4 : vector<1x8x8xf32> to vector<8x8xf32>
    %cst = arith.constant dense<0.000000e+00> : vector<8x128xf32>
    %6 = tpu.matmul %5, %1, %cst {dimension_numbers = #tpu.dot_dimension_numbers<[1], [0], [0], [1], [0, 0, 1, 1], [], []>} : vector<8x8xf32>, vector<8x128xf32>, vector<8x128xf32> -> vector<8x128xf32>
    %7 = vector.extract_strided_slice %3 {offsets = [0, 0, 0], sizes = [1, 8, 1], strides = [1, 1, 1]} : vector<3x8x1xf32> to vector<1x8x1xf32>
    %8 = vector.shape_cast %7 : vector<1x8x1xf32> to vector<8x1xf32>
    %9 = vector.broadcast %8 : vector<8x1xf32> to vector<8x128xf32>
    %10 = arith.addf %6, %9 : vector<8x128xf32>
    %cst_8 = arith.constant 0.000000e+00 : f32
    %11 = vector.broadcast %cst_8 : f32 to vector<8x128xf32>
    %12 = arith.maximumf %10, %11 : vector<8x128xf32>
    %13 = vector.extract_strided_slice %2 {offsets = [1, 0, 0], sizes = [1, 8, 8], strides = [1, 1, 1]} : vector<3x8x8xf32> to vector<1x8x8xf32>
    %14 = vector.shape_cast %13 : vector<1x8x8xf32> to vector<8x8xf32>
    %cst_9 = arith.constant dense<0.000000e+00> : vector<8x128xf32>
    %15 = tpu.matmul %14, %12, %cst_9 {dimension_numbers = #tpu.dot_dimension_numbers<[1], [0], [0], [1], [0, 0, 1, 1], [], []>} : vector<8x8xf32>, vector<8x128xf32>, vector<8x128xf32> -> vector<8x128xf32>
    %16 = vector.extract_strided_slice %3 {offsets = [1, 0, 0], sizes = [1, 8, 1], strides = [1, 1, 1]} : vector<3x8x1xf32> to vector<1x8x1xf32>
    %17 = vector.shape_cast %16 : vector<1x8x1xf32> to vector<8x1xf32>
    %18 = vector.broadcast %17 : vector<8x1xf32> to vector<8x128xf32>
    %19 = arith.addf %15, %18 : vector<8x128xf32>
    %cst_10 = arith.constant 0.000000e+00 : f32
    %20 = vector.broadcast %cst_10 : f32 to vector<8x128xf32>
    %21 = arith.maximumf %19, %20 : vector<8x128xf32>
    %22 = vector.extract_strided_slice %2 {offsets = [2, 0, 0], sizes = [1, 8, 8], strides = [1, 1, 1]} : vector<3x8x8xf32> to vector<1x8x8xf32>
    %23 = vector.shape_cast %22 : vector<1x8x8xf32> to vector<8x8xf32>
    %cst_11 = arith.constant dense<0.000000e+00> : vector<8x128xf32>
    %24 = tpu.matmul %23, %21, %cst_11 {dimension_numbers = #tpu.dot_dimension_numbers<[1], [0], [0], [1], [0, 0, 1, 1], [], []>} : vector<8x8xf32>, vector<8x128xf32>, vector<8x128xf32> -> vector<8x128xf32>
    %25 = vector.extract_strided_slice %3 {offsets = [2, 0, 0], sizes = [1, 8, 1], strides = [1, 1, 1]} : vector<3x8x1xf32> to vector<1x8x1xf32>
    %26 = vector.shape_cast %25 : vector<1x8x1xf32> to vector<8x1xf32>
    %27 = vector.broadcast %26 : vector<8x1xf32> to vector<8x128xf32>
    %28 = arith.addf %24, %27 : vector<8x128xf32>
    %cst_12 = arith.constant 0.000000e+00 : f32
    %29 = vector.broadcast %cst_12 : f32 to vector<8x128xf32>
    %30 = arith.maximumf %28, %29 : vector<8x128xf32>
    %c0_13 = arith.constant 0 : index
    %c0_14 = arith.constant 0 : index
    %c0_15 = arith.constant 0 : index
    %31 = vector.load %arg5[%c0_13, %c0_14, %c0_15] : memref<1x8x128xf32, #tpu.memory_space<vmem>>, vector<1x8x128xf32>
    %32 = vector.shape_cast %31 : vector<1x8x128xf32> to vector<8x128xf32>
    %33 = vector.shape_cast %30 : vector<8x128xf32> to vector<1x8x128xf32>
    tpu.vector_store %arg5[%c0_13, %c0_14, %c0_15], %33 {strides = array<i32>} : memref<1x8x128xf32, #tpu.memory_space<vmem>>, vector<1x8x128xf32>,
    return
  }
  func.func @transform_0(%arg0: i32, %arg1: i32) -> (i32, i32, i32) {
    %c0_i32 = arith.constant 0 : i32
    %c0_i32_0 = arith.constant 0 : i32
    return %arg0, %c0_i32, %arg1 : i32, i32, i32
  }
  func.func @transform_1(%arg0: i32, %arg1: i32) -> (i32, i32, i32) {
    %c0_i32 = arith.constant 0 : i32
    %c0_i32_0 = arith.constant 0 : i32
    %c0_i32_1 = arith.constant 0 : i32
    %c0_i32_2 = arith.constant 0 : i32
    return %c0_i32, %c0_i32_0, %c0_i32_1 : i32, i32, i32
  }
  func.func @transform_2(%arg0: i32, %arg1: i32) -> (i32, i32, i32) {
    %c0_i32 = arith.constant 0 : i32
    %c0_i32_0 = arith.constant 0 : i32
    %c0_i32_1 = arith.constant 0 : i32
    %c0_i32_2 = arith.constant 0 : i32
    return %c0_i32, %c0_i32_0, %c0_i32_1 : i32, i32, i32
  }
  func.func @transform_3(%arg0: i32, %arg1: i32) -> (i32, i32, i32) {
    %c0_i32 = arith.constant 0 : i32
    %c0_i32_0 = arith.constant 0 : i32
    return %arg0, %c0_i32, %arg1 : i32, i32, i32
  }
}

</mosaic_0001>

<bundles_post_ra>
// kernel: signal_encoder.1
= control target key start
LH: loop header
LB: loop body
LE: loop exit
PB: predicated region body
PF: predicated region fallthrough
CT: control target
= control target key end

     0   :  { %8 = vsyncpa [#allocation3], 0  ;;  %s858_s0 = inlined_call_operand.vmem [shape: f32[2,8,128], index: 0, kind: input, shape index: {}]   ;;  %s859_s1 = inlined_call_operand.vmem [shape: f32[3,8,8], index: 1, kind: input, shape index: {}]   ;;  %s860_s2 = inlined_call_operand.vmem [shape: f32[3,8,1], index: 2, kind: input, shape index: {}]   ;;  %s861_s3 = inlined_call_operand.hbm [shape: f32[2,8,128], index: 3, kind: output, shape index: {}]  }
   0x1   :  { %10 = vsyncpa [#allocation3 + $0x1], 0  ;;  %s722_s12 = smov 0   ;;  %s724_s13 = smov 0  }
   0x2   :  { %s726_s14 = smov 0   ;;  %s728_s15 = smov 0  }
   0x3   :  { %s730_s16 = smov 0   ;;  %s732_s17 = smov 0  }
   0x4 LB: > { %s523_s18 = sadd.s32 4294967295, %s696_s17   ;;  %s524_s19 = sadd.s32 4294967294, %s696_s17   ;;  %s696_s17 = sphi %s732_s17, %s16_s17   ;;  %s692_s16 = sphi %s730_s16, %s868_s16   ;;  %s688_s15 = sphi %s728_s15, %s867_s15   ;;  %s684_s14 = sphi %s726_s14, %s866_s14   ;;  %s680_s13 = sphi %s724_s13, %s865_s13   ;;  %s676_s12 = sphi %s722_s12, %s864_s12  }
   0x5   : > { %s28_s20 = sadd.s32 1, %s692_s16  ;;  %s107_s21 = sadd.s32 1, %s684_s14 }
   0x6   : > { %p30_p0 = scmp.ge.s32.totalorder %s28_s20, 2  ;;  %p117_p1 = scmp.ne.s32.totalorder %s684_s14, %s680_s13 }
   0x7   : > { %p118_p2 = scmp.eq.s32.totalorder %s523_s18, 1  ;;  %p123_p3 = scmp.ne.s32.totalorder %s680_s13, %s676_s12 }
   0x8   : > { %s870_s20 = smov (%p30_p0, %s28_s20), 0  ;;  %p124_p5 = scmp.eq.s32.totalorder %s524_s19, 1 }
   0x9   : > { %p762_p4 = por %p118_p2, %p117_p1  ;;  %s102_s23 = ssub.s32 %s692_s16, %s870_s20 }
   0xa   : > { %p527_p6 = scmp.ge.s32.totalorder %s696_s17, 1  ;;  %p105_p7 = scmp.eq.s32.totalorder %s102_s23, 0 }
   0xb   : > { %p769_p8 = por %p124_p5, %p123_p3  ;;  %p158_p9 = scmp.lt.s32.totalorder %s696_s17, 3 }
   0xc   : > { %s775_s25 = scalar_select %p105_p7, %s684_s14, %s107_s21  }
   0xd   : > { %p159_p10 = pnand %p527_p6, %p158_p9 }
   0xe   : > { %p184_p11 = scmp.lt.s32.totalorder (!%p159_p10), %s688_s15, 1  ;;  %v698_v0 = vmov (!%p159_p10), 0.0   ;;  %vm699_vm0 = vmmov (!%p159_p10), 0   ;;  %v195_v1 = vld [vmem:[%s860_s2] sm:$0xff] (!%p159_p10)  ;;  %v700_v2 = vmov (!%p159_p10), 0   ;;  %v196_v3 = vld [vmem:[%s860_s2 + $0x8] sm:$0xff] (!%p159_p10) }
   0xf   : > { %162 = sbr.rel (%p159_p10) target bundleno = 692 (0x2b4), region = 32  ;;  %543 = vmatprep.subr.mxu0 (!%p159_p10), %v698_v0  ;;  %545 = vmatprep.mubr.msk.f32.mxu0 (!%p159_p10), %vm699_vm0, %v698_v0  ;;  %v192_v4 = vld [vmem:[%s859_s1] sm:$0xff] (!%p159_p10)  ;;  %vm203_vm1 = vcmask (!%p159_p10), 64512   ;;  %v193_v11 = vld [vmem:[%s859_s1 + $0x8] sm:$0xff] (!%p159_p10)  ;;  %v197_v12 = vld [vmem:[%s860_s2 + $0x10] sm:$0xff] (!%p159_p10)  ;;  %s181_s26 = sand.u32 (!%p159_p10), 1, %s680_s13  }
  0x10   : > { %616 = vset.pattern.permute.xlu0 (!%p159_p10), %v700_v2  ;;  %548 = vmatprep.subr.mxu1 (!%p159_p10), %v698_v0  ;;  %v194_v18 = vld [vmem:[%s859_s1 + $0x10] sm:$0xff] (!%p159_p10)  ;;  %s528_s27 = sshll.u32 (!%p159_p10), %s181_s26, 3 }
  0x11   : > { %200 = vperm.xlu0 (!%p159_p10), %616, %v195_v1   ;;  %550 = vmatprep.mubr.msk.f32.mxu1 (!%p159_p10), %vm699_vm0, %v698_v0 }
  0x12   : > { %617 = vset.pattern.permute.xlu1 (!%p159_p10), %v700_v2 }
  0x13   : > { %359 = vperm.xlu1 (!%p159_p10), %617, %v197_v12  }
  0x15   : > { %280 = vperm.xlu0 (!%p159_p10), %616, %v196_v3  }
  0x16   : > { %s185_s28 = scalar_select %p184_p11, %s688_s15, 1 }
  0x18   : > { %s529_s29 = sshll.u32 %s185_s28, 3  ;;  %s534_s28 = sshll.u32 %s688_s15, 7 }
  0x19   : > { %s190_s7 = scalar_lea.vmem %s858_s0, %s529_s29  ;;  %s183_s29 = scalar_lea.vmem [#allocation2], %s528_s27 }
  0x1a   : > { %v191_v5 = vld [vmem:[%s190_s7] sm:$0xff]  ;;  %s452_s30 = sshll.u32 %s183_s29, 4  ;;  %s811_s6 = scalar_lea.hbm %s861_s3, %s534_s28  ;;  %s813_s30 = int_to_ptr.vmem [resolvable:$true] %s452_s30 }
  0x1b   : > { %544 = vmatpush3.msra.mxu0 %v191_v5  ;;  %s438_s7 = scalar_lea.sflag [#allocation3], %s181_s26  ;;  %s618_s8 = scalar_lea.vmem %s813_s30, 128 }
  0x1c   : > { %546 = vmatmul.mubr.msk.f32.vlgmr.msra.gmra.mrb[0].mxu0 %vm203_vm1, %v192_v4  ;;  %553 = vmatprep.subr.mxu0 %v698_v0  ;;  %p619_p12 = scmp.ne.s32.totalorder %s813_s30, %s618_s8  ;;  %s701_s15 = smov [#allocation2]  }
  0x1d   : > { %555 = vmatprep.mubr.msk.f32.mxu0 %vm699_vm0, %v698_v0  ;;  %s622_s9 = sshll.u32 %s701_s15, 4  ;;  %s623_s9 = int_to_ptr.vmem [resolvable:$false] %s622_s9 }
  0x1e   : > { %p620_p13 = pnand %p619_p12, %p762_p4  ;;  %s624_s10 = scalar_lea.vmem %s623_s9, 256 }
  0x1f   : > { %p625_p1 = scmp.lt.s32.totalorder %s813_s30, %s623_s9  ;;  %p626_p2 = scmp.lt.s32.totalorder %s624_s10, %s618_s8 }
  0x20   : > { %p621_p0 = pneg %p620_p13 }
  0x21   : > { %p627_p3 = por %p626_p2, %p625_p1 }
  0x23   : > { %p628_p5 = pnand %p627_p3, %p621_p0 }
  0x90   : > { %v201_v6 = vpop.permute.xlu0 %200 }
  0x92   : > { %v360_v19 = vpop.permute.xlu1 %359 }
  0x94   : > { %v281_v13 = vpop.permute.xlu0 %280 }
  0xef   : > { %v273_v7 = vpop.f32.mrb[0].mxu0 }
  0xf0   : > { %v274_v8 = vadd.f32 %v273_v7, %v201_v6  ;;  %v547_v9 = vpop.f32.mrb[1].mxu0 }
  0xf2   : > { %v277_v10 = vmax.f32 %v274_v8, 0.0 }
  0xf4   : > { %549 = vmatpush3.msra.mxu1 %v277_v10 }
  0xf5   : > { %551 = vmatmul.mubr.msk.f32.vlgmr.msra.gmra.mrb[0].mxu1 %vm203_vm1, %v193_v11 }
 0x1c8   : > { %v352_v14 = vpop.f32.mrb[0].mxu1 }
 0x1c9   : > { %v353_v15 = vadd.f32 %v352_v14, %v281_v13  ;;  %v552_v16 = vpop.f32.mrb[1].mxu1 }
 0x1cb   : > { %v356_v17 = vmax.f32 %v353_v15, 0.0 }
 0x1cd   : > { %554 = vmatpush3.msra.mxu0 %v356_v17 }
 0x1ce   : > { %556 = vmatmul.mubr.msk.f32.vlgmr.msra.gmra.mrb[2].mxu0 %vm203_vm1, %v194_v18 }
 0x2a1   : > { %v431_v20 = vpop.f32.mrb[2].mxu0 }
 0x2a2   : > { %v432_v21 = vadd.f32 %v431_v20, %v360_v19  ;;  %v557_v22 = vpop.f32.mrb[3].mxu0 }
 0x2a4   : > { %v435_v23 = vmax.f32 %v432_v21, 0.0 }
 0x2a6   : > { %436 = vst [vmem:[%s183_s29] sm:$0xff] %v435_v23 }
 0x2a7   : > { %631 = shalt.err (!%p628_p5)
}
 0x2a8   : > { %s632_s11 = scalar_lea.hbm %s811_s6, 128  ;;  %s636_s21 = scalar_lea.hbm %s861_s3, 256 }
 0x2a9   : > { %p633_p6 = scmp.ne.s32.totalorder %s811_s6, %s632_s11  ;;  %p637_p10 = scmp.lt.u32.totalorder %s811_s6, %s861_s3 }
 0x2aa   : > { %p638_p11 = scmp.lt.u32.totalorder %s636_s21, %s632_s11  ;;  %p640_p13 = scmp.lt.u32.totalorder %s632_s11, %s811_s6 }
 0x2ab   : > { %p634_p7 = pnand %p633_p6, %p762_p4 }
 0x2ac   : > { %p639_p12 = por %p638_p11, %p637_p10 }
 0x2ad   : > { %p635_p9 = pneg %p634_p7 }
 0x2ae   : > { %p641_p0 = por %p640_p13, %p639_p12 }
 0x2b0   : > { %p642_p1 = pnand %p641_p0, %p635_p9 }
 0x2b2   : > { %645 = shalt.err (!%p642_p1)
}
 0x2b3   : > { %558 = dma.vmem_to_hbm [thread:$0]  (%p762_p4), %s813_s30, 128, %s811_s6, %s438_s7  }
 0x2b4 PF: > { %p564_p2 = scmp.ge.s32.totalorder %s696_s17, 2  ;;  %s464_s27 = sand.u32 1, %s676_s12  }
 0x2b5   : > { %s465_s28 = scalar_lea.sflag [#allocation3], %s464_s27 }
 0x2b6   : > { %p561_p3 = pnand %p564_p2, %p769_p8 }
 0x2b8   : > { %671 = dma.done.wait (!%p561_p3), %s465_s28, 128  }
 0x2b9   : > { %673 = vsyncadd (!%p561_p3), %s465_s28, 4294967168  ;;  %s16_s17 = sadd.s32 1, %s696_s17   ;;  %s864_s12 = smov %s680_s13 }
 0x2ba   : > { %p13_p5 = scmp.ge.s32.totalorder %s16_s17, 4   ;;  %s865_s13 = smov %s684_s14 }
 0x2bb   : > { %s866_s14 = smov %s775_s25  ;;  %s867_s15 = smov %s692_s16 }
 0x2bc   : > { %s868_s16 = smov %s870_s20  ;;  %15 = sbr.rel (!%p13_p5) target bundleno = 4 (0x4), region = 67 }
 0x2c3   :  { %470 = vsyncpa [#allocation3], 1 }
 0x2c4   :  { %472 = vsyncpa [#allocation3 + $0x1], 1 }

</bundles_post_ra>
